<compile_context>
chip_gen: v7x
topology: tpu7x:2x2x1
jax: 0.10.0
libtpu: 0.0.40
codegen_flags: <defaults>
</compile_context>

<pallas_src>
import jax
import jax.numpy as jnp
from jax.experimental import pallas as pl
from jax.experimental.pallas import tpu as pltpu


def _round_up(x, m):
    return pl.cdiv(x, m) * m


def mlp_kernel(x_ref, w1_ref, b1_ref, w2_ref, b2_ref, o_ref):
    # x_ref : (bt, in)        natural layout, streamed & double-buffered
    # w1_ref: (in, hid_pad)   resident params (constant index_map)
    # b1_ref: (1, hid_pad)
    # w2_ref: (hid_pad, out)
    # b2_ref: (1, out)
    # o_ref : (bt, out)
    h = jnp.dot(x_ref[...], w1_ref[...], preferred_element_type=jnp.float32)
    h = jnp.maximum(h + b1_ref[...], 0.0)          # padded hidden cols stay exactly 0
    y = jnp.dot(h, w2_ref[...], preferred_element_type=jnp.float32)
    o_ref[...] = (y + b2_ref[...]).astype(o_ref.dtype)


def simple_mlp(x, w1, b1, w2, b2, *, block_batch=8192):
    """Forward of SimpleMLP.

    x : (batch, 10) float32
    w1: (10, 5)  b1: (5,)     (stored [in, out], i.e. transposed vs PyTorch)
    w2: (5, 2)   b2: (2,)
    returns (batch, 2)
    """
    batch, in_f = x.shape
    hid = w1.shape[1]
    out_f = w2.shape[1]
    hid_pad = _round_up(hid, 8)          # sublane-align the hidden dim (zeros inert)

    # ---- batch tile selection (lane-aligned, VMEM-budget-driven) -------------
    block_batch = max(128, (block_batch // 128) * 128)          # always 128-aligned
    # Keep multiple grid steps when there is enough work so the "parallel" grid
    # axis can be sharded across v7x's two TensorCores.
    bt = min(block_batch, max(2048, _round_up(pl.cdiv(batch, 4), 128)))
    bt = min(bt, _round_up(batch, 128))
    padded_batch = _round_up(batch, bt)

    # Pad the batch dim only when needed (no-op copy avoided for aligned batches).
    x_in = x if padded_batch == batch else jnp.pad(x, ((0, padded_batch - batch), (0, 0)))

    # One-time parameter packing (tiny).
    w1p = jnp.pad(w1, ((0, 0), (0, hid_pad - hid)))              # (in, hid_pad)
    b1p = jnp.pad(b1, (0, hid_pad - hid)).reshape(1, hid_pad)    # (1, hid_pad)
    w2p = jnp.pad(w2, ((0, hid_pad - hid), (0, 0)))              # (hid_pad, out)
    b2p = b2.reshape(1, out_f)                                   # (1, out)

    grid = (padded_batch // bt,)
    itemsize = x.dtype.itemsize
    cost = pl.CostEstimate(
        flops=2 * padded_batch * (in_f * hid_pad + hid_pad * out_f),
        transcendentals=0,
        bytes_accessed=(padded_batch * (in_f + out_f)
                        + in_f * hid_pad + hid_pad + hid_pad * out_f + out_f) * itemsize,
    )

    y = pl.pallas_call(
        mlp_kernel,
        out_shape=jax.ShapeDtypeStruct((padded_batch, out_f), x.dtype),
        grid=grid,
        in_specs=[
            pl.BlockSpec((bt, in_f), lambda i: (i, 0)),         # streamed input tile
            pl.BlockSpec((in_f, hid_pad), lambda i: (0, 0)),    # resident weights
            pl.BlockSpec((1, hid_pad), lambda i: (0, 0)),
            pl.BlockSpec((hid_pad, out_f), lambda i: (0, 0)),
            pl.BlockSpec((1, out_f), lambda i: (0, 0)),
        ],
        out_specs=pl.BlockSpec((bt, out_f), lambda i: (i, 0)),
        compiler_params=pltpu.CompilerParams(
            dimension_semantics=("parallel",),                  # megacore sharding (v7x)
            vmem_limit_bytes=48 * 1024 * 1024,                  # fits v7x's 64 MiB VMEM
        ),
        cost_estimate=cost,
    )(x_in, w1p, b1p, w2p, b2p)

    return y if padded_batch == batch else y[:batch]


def init_params(key, in_features=10, hidden=5, out_features=2, dtype=jnp.float32):
    """Deterministic init mimicking PyTorch nn.Linear default (uniform +/- 1/sqrt(fan_in))."""
    k1, k2, k3, k4 = jax.random.split(key, 4)
    bound1 = 1.0 / jnp.sqrt(in_features)
    bound2 = 1.0 / jnp.sqrt(hidden)
    # Stored as [in, out] (transposed vs PyTorch's [out, in]) so math is x @ W.
    w1 = jax.random.uniform(k1, (in_features, hidden), dtype, -bound1, bound1)
    b1 = jax.random.uniform(k2, (hidden,), dtype, -bound1, bound1)
    w2 = jax.random.uniform(k3, (hidden, out_features), dtype, -bound2, bound2)
    b2 = jax.random.uniform(k4, (out_features,), dtype, -bound2, bound2)
    return w1, b1, w2, b2


def reference_mlp(x, w1, b1, w2, b2):
    h = jnp.maximum(x @ w1 + b1, 0.0)
    return h @ w2 + b2


if __name__ == "__main__":
    key = jax.random.PRNGKey(0)
    k_x, k_p = jax.random.split(key)

    batch, in_features = 8, 10
    x = jax.random.normal(k_x, (batch, in_features), jnp.float32)
    w1, b1, w2, b2 = init_params(k_p)

    out = simple_mlp(x, w1, b1, w2, b2)
    out = jax.block_until_ready(out)

    ref = reference_mlp(x, w1, b1, w2, b2)
    assert out.shape == (batch, 2), out.shape
    assert jnp.allclose(out, ref, atol=1e-5, rtol=1e-5), "mismatch vs reference"

    print("KERNEL_OK")
</pallas_src>

<mosaic_0001>
module attributes {stable_mosaic.version = 11 : i64} {
  func.func @mlp_kernel(%arg0: i32, %arg1: memref<128x10xf32, #tpu.memory_space<vmem>>, %arg2: memref<10x8xf32, #tpu.memory_space<vmem>>, %arg3: memref<1x8xf32, #tpu.memory_space<vmem>>, %arg4: memref<8x2xf32, #tpu.memory_space<vmem>>, %arg5: memref<1x2xf32, #tpu.memory_space<vmem>>, %arg6: memref<128x2xf32, #tpu.memory_space<vmem>>) attributes {dimension_semantics = [#tpu.dimension_semantics<parallel>], iteration_bounds = array<i64: 1>, scalar_prefetch = 0 : i64, scratch_operands = 0 : i64, tpu.core_type = #tpu.core_type<tc>, window_params = [{transform_indices = @transform_0, window_bounds = array<i64: 128, 10>}, {pipeline_mode = #tpu.pipeline_mode<synchronous>, transform_indices = @transform_1, window_bounds = array<i64: 10, 8>}, {pipeline_mode = #tpu.pipeline_mode<synchronous>, transform_indices = @transform_2, window_bounds = array<i64: 1, 8>}, {pipeline_mode = #tpu.pipeline_mode<synchronous>, transform_indices = @transform_3, window_bounds = array<i64: 8, 2>}, {pipeline_mode = #tpu.pipeline_mode<synchronous>, transform_indices = @transform_4, window_bounds = array<i64: 1, 2>}, {transform_indices = @transform_5, window_bounds = array<i64: 128, 2>}]} {
    %c0 = arith.constant 0 : index
    %c0_0 = arith.constant 0 : index
    %0 = vector.load %arg1[%c0, %c0_0] : memref<128x10xf32, #tpu.memory_space<vmem>>, vector<128x10xf32>
    %c0_1 = arith.constant 0 : index
    %c0_2 = arith.constant 0 : index
    %1 = vector.load %arg2[%c0_1, %c0_2] : memref<10x8xf32, #tpu.memory_space<vmem>>, vector<10x8xf32>
    %cst = arith.constant dense<0.000000e+00> : vector<128x8xf32>
    %2 = tpu.matmul %0, %1, %cst {dimension_numbers = #tpu.dot_dimension_numbers<[1], [0], [0], [1], [0, 0, 1, 1], [], []>} : vector<128x10xf32>, vector<10x8xf32>, vector<128x8xf32> -> vector<128x8xf32>
    %c0_3 = arith.constant 0 : index
    %c0_4 = arith.constant 0 : index
    %3 = vector.load %arg3[%c0_3, %c0_4] : memref<1x8xf32, #tpu.memory_space<vmem>>, vector<1x8xf32>
    %4 = vector.broadcast %3 : vector<1x8xf32> to vector<128x8xf32>
    %5 = arith.addf %2, %4 : vector<128x8xf32>
    %cst_5 = arith.constant 0.000000e+00 : f32
    %6 = vector.broadcast %cst_5 : f32 to vector<128x8xf32>
    %7 = arith.maximumf %5, %6 : vector<128x8xf32>
    %c0_6 = arith.constant 0 : index
    %c0_7 = arith.constant 0 : index
    %8 = vector.load %arg4[%c0_6, %c0_7] : memref<8x2xf32, #tpu.memory_space<vmem>>, vector<8x2xf32>
    %cst_8 = arith.constant dense<0.000000e+00> : vector<128x2xf32>
    %9 = tpu.matmul %7, %8, %cst_8 {dimension_numbers = #tpu.dot_dimension_numbers<[1], [0], [0], [1], [0, 0, 1, 1], [], []>} : vector<128x8xf32>, vector<8x2xf32>, vector<128x2xf32> -> vector<128x2xf32>
    %c0_9 = arith.constant 0 : index
    %c0_10 = arith.constant 0 : index
    %10 = vector.load %arg5[%c0_9, %c0_10] : memref<1x2xf32, #tpu.memory_space<vmem>>, vector<1x2xf32>
    %11 = vector.broadcast %10 : vector<1x2xf32> to vector<128x2xf32>
    %12 = arith.addf %9, %11 : vector<128x2xf32>
    %c0_11 = arith.constant 0 : index
    %c0_12 = arith.constant 0 : index
    %13 = vector.load %arg6[%c0_11, %c0_12] : memref<128x2xf32, #tpu.memory_space<vmem>>, vector<128x2xf32>
    tpu.vector_store %arg6[%c0_11, %c0_12], %12 {strides = array<i32>} : memref<128x2xf32, #tpu.memory_space<vmem>>, vector<128x2xf32>,
    return
  }
  func.func @transform_0(%arg0: i32) -> (i32, i32) {
    %c0_i32 = arith.constant 0 : i32
    %c0_i32_0 = arith.constant 0 : i32
    return %arg0, %c0_i32 : i32, i32
  }
  func.func @transform_1(%arg0: i32) -> (i32, i32) {
    %c0_i32 = arith.constant 0 : i32
    %c0_i32_0 = arith.constant 0 : i32
    %c0_i32_1 = arith.constant 0 : i32
    return %c0_i32, %c0_i32_0 : i32, i32
  }
  func.func @transform_2(%arg0: i32) -> (i32, i32) {
    %c0_i32 = arith.constant 0 : i32
    %c0_i32_0 = arith.constant 0 : i32
    %c0_i32_1 = arith.constant 0 : i32
    return %c0_i32, %c0_i32_0 : i32, i32
  }
  func.func @transform_3(%arg0: i32) -> (i32, i32) {
    %c0_i32 = arith.constant 0 : i32
    %c0_i32_0 = arith.constant 0 : i32
    %c0_i32_1 = arith.constant 0 : i32
    return %c0_i32, %c0_i32_0 : i32, i32
  }
  func.func @transform_4(%arg0: i32) -> (i32, i32) {
    %c0_i32 = arith.constant 0 : i32
    %c0_i32_0 = arith.constant 0 : i32
    %c0_i32_1 = arith.constant 0 : i32
    return %c0_i32, %c0_i32_0 : i32, i32
  }
  func.func @transform_5(%arg0: i32) -> (i32, i32) {
    %c0_i32 = arith.constant 0 : i32
    %c0_i32_0 = arith.constant 0 : i32
    return %arg0, %c0_i32 : i32, i32
  }
}

</mosaic_0001>

<bundles_post_ra>
// kernel: tpu_custom_call.1
= control target key start
LH: loop header
LB: loop body
LE: loop exit
PB: predicated region body
PF: predicated region fallthrough
CT: control target
= control target key end

     0   :  { %vm94_vm0 = vcmask 1041408   ;;  %vm45_vm1 = vcmask 80896   ;;  %vm613_vm2 = vmmov 1   ;;  %vm267_vm4 = vcmask 64512   ;;  %s803_s1 = inlined_call_operand.vmem [shape: f32[10,8], index: 1, kind: input, shape index: {}]   ;;  %s804_s0 = inlined_call_operand.vmem [shape: f32[128,10], index: 0, kind: input, shape index: {}]   ;;  %s805_s3 = inlined_call_operand.vmem [shape: f32[8,2], index: 3, kind: input, shape index: {}]   ;;  %s806_s2 = inlined_call_operand.vmem [shape: f32[1,8], index: 2, kind: input, shape index: {}]   ;;  %s807_s4 = inlined_call_operand.vmem [shape: f32[1,2], index: 4, kind: input, shape index: {}]   ;;  %s808_s5 = inlined_call_operand.vmem [shape: f32[128,2], index: 5, kind: output, shape index: {}]  }
   0x1   :  { %v36_v0 = vld [vmem:[%s803_s1] sm:$0xff]  ;;  %v37_v1 = vld [vmem:[%s803_s1 + $0x8] sm:$0x3]  ;;  %vm607_vm3 = vmpackc.low %vm94_vm0, %vm613_vm2  ;;  %vm461_vm5 = vcmask 15360  }
   0x2   :  { %v606_v2 = vpack.c.bf16 %v37_v1, %v36_v0  ;;  %v20_v3 = vld [vmem:[%s804_s0] sm:$0xff]  ;;  %v21_v4 = vld [vmem:[%s804_s0 + $0x8] sm:$0xff]  ;;  %v22_v5 = vld [vmem:[%s804_s0 + $0x10] sm:$0xff] }
   0x3   :  { %556 = vmatprep.mubr.msk.f32.mxu0 %vm45_vm1, %v20_v3  ;;  %v23_v6 = vld [vmem:[%s804_s0 + $0x18] sm:$0xff]  ;;  %v24_v7 = vld [vmem:[%s804_s0 + $0x20] sm:$0xff]  ;;  %v25_v8 = vld [vmem:[%s804_s0 + $0x28] sm:$0xff] }
   0x4   :  { %608 = vmatprep.subr.msk.bf16.mxu0 %vm607_vm3, %v606_v2  ;;  %v26_v9 = vld [vmem:[%s804_s0 + $0x30] sm:$0xff]  ;;  %v27_v10 = vld [vmem:[%s804_s0 + $0x38] sm:$0xff]  ;;  %v28_v11 = vld [vmem:[%s804_s0 + $0x40] sm:$0xff] }
   0x5   :  { %611 = vmatpush3.bf16.msk.msra.mxu0 %vm607_vm3, %v606_v2  ;;  %v29_v12 = vld [vmem:[%s804_s0 + $0x48] sm:$0xff]  ;;  %v30_v13 = vld [vmem:[%s804_s0 + $0x50] sm:$0xff]  ;;  %v31_v14 = vld [vmem:[%s804_s0 + $0x58] sm:$0xff] }
   0x6   :  { %v32_v15 = vld [vmem:[%s804_s0 + $0x60] sm:$0xff]  ;;  %v33_v16 = vld [vmem:[%s804_s0 + $0x68] sm:$0xff]  ;;  %v34_v17 = vld [vmem:[%s804_s0 + $0x70] sm:$0xff] }
   0x7   :  { %v35_v18 = vld [vmem:[%s804_s0 + $0x78] sm:$0xff]  ;;  %v259_v19 = vld [vmem:[%s805_s3] sm:$0xff] }
   0x8   :  { %557 = vmatmul.mubr.msk.f32.vlgmr.msra.gmra.mrb[0].mxu0 %vm45_vm1, %v21_v4  ;;  %580 = vmatprep.subr.mxu1 %v259_v19  ;;  %v482_v20 = vld [vmem:[%s806_s2] ss:$0 sm:$0xff] }
   0x9   :  { %559 = vmatprep.mubr.msk.f32.mxu0 %vm45_vm1, %v22_v5  ;;  %581 = vmatpush3.msra.mxu1 %v259_v19  ;;  %v500_v5 = vld [vmem:[%s807_s4] ss:$0 sm:$0xff] }
   0xc   :  { %560 = vmatmul.mubr.msk.f32.gmra.mrb[2].mxu0 %vm45_vm1, %v23_v6 }
   0xd   :  { %562 = vmatprep.mubr.msk.f32.mxu0 %vm45_vm1, %v24_v7 }
  0x10   :  { %563 = vmatmul.mubr.msk.f32.gmra.mrb[4].mxu0 %vm45_vm1, %v25_v8 }
  0x11   :  { %565 = vmatprep.mubr.msk.f32.mxu0 %vm45_vm1, %v26_v9 }
  0x14   :  { %566 = vmatmul.mubr.msk.f32.gmra.mrb[6].mxu0 %vm45_vm1, %v27_v10 }
  0x15   :  { %568 = vmatprep.mubr.msk.f32.mxu0 %vm45_vm1, %v28_v11 }
  0x18   :  { %569 = vmatmul.mubr.msk.f32.gmra.mrb[8].mxu0 %vm45_vm1, %v29_v12 }
  0x19   :  { %571 = vmatprep.mubr.msk.f32.mxu0 %vm45_vm1, %v30_v13 }
  0x1c   :  { %572 = vmatmul.mubr.msk.f32.gmra.mrb[10].mxu0 %vm45_vm1, %v31_v14 }
  0x1d   :  { %574 = vmatprep.mubr.msk.f32.mxu0 %vm45_vm1, %v32_v15 }
  0x20   :  { %575 = vmatmul.mubr.msk.f32.gmra.mrb[12].mxu0 %vm45_vm1, %v33_v16 }
  0x21   :  { %577 = vmatprep.mubr.msk.f32.mxu0 %vm45_vm1, %v34_v17 }
  0x24   :  { %578 = vmatmul.mubr.msk.f32.gmra.mrb[14].mxu0 %vm45_vm1, %v35_v18 }
  0xdb   :  { %v558_v21 = vpop.f32.mrb[0].mxu0 }
  0xdc   :  { %v170_v22 = vadd.f32 %v558_v21, %v482_v20  ;;  %v164_v23 = vpop.f32.mrb[1].mxu0 }
  0xdd   :  { %v165_v24 = vadd.f32 %v482_v20, %v164_v23 }
  0xde   :  { %v244_v27 = vmax.f32 %v170_v22, 0.0 }
  0xdf   :  { %v243_v25 = vmax.f32 %v165_v24, 0.0  ;;  %v561_v26 = vpop.f32.mrb[2].mxu0 }
  0xe0   :  { %v180_v28 = vadd.f32 %v561_v26, %v482_v20  ;;  %v174_v29 = vpop.f32.mrb[3].mxu0 }
  0xe1   :  { %v175_v30 = vadd.f32 %v482_v20, %v174_v29  ;;  %582 = vmatprep.mubr.msk.f32.mxu1 %vm267_vm4, %v243_v25 }
  0xe2   :  { %583 = vmatmul.mubr.msk.f32.vlgmr.msra.gmra.mrb[0].mxu1 %vm267_vm4, %v244_v27  ;;  %v246_v33 = vmax.f32 %v180_v28, 0.0 }
  0xe3   :  { %v245_v31 = vmax.f32 %v175_v30, 0.0  ;;  %v564_v32 = vpop.f32.mrb[4].mxu0 }
  0xe4   :  { %v190_v34 = vadd.f32 %v564_v32, %v482_v20  ;;  %v184_v35 = vpop.f32.mrb[5].mxu0 }
  0xe5   :  { %v185_v36 = vadd.f32 %v482_v20, %v184_v35  ;;  %585 = vmatprep.mubr.msk.f32.mxu1 %vm267_vm4, %v245_v31 }
  0xe6   :  { %586 = vmatmul.mubr.msk.f32.gmra.mrb[2].mxu1 %vm267_vm4, %v246_v33  ;;  %v248_v39 = vmax.f32 %v190_v34, 0.0 }
  0xe7   :  { %v247_v37 = vmax.f32 %v185_v36, 0.0  ;;  %v567_v38 = vpop.f32.mrb[6].mxu0 }
  0xe8   :  { %v200_v40 = vadd.f32 %v567_v38, %v482_v20  ;;  %v194_v41 = vpop.f32.mrb[7].mxu0 }
  0xe9   :  { %v195_v42 = vadd.f32 %v482_v20, %v194_v41  ;;  %588 = vmatprep.mubr.msk.f32.mxu1 %vm267_vm4, %v247_v37 }
  0xea   :  { %589 = vmatmul.mubr.msk.f32.gmra.mrb[4].mxu1 %vm267_vm4, %v248_v39  ;;  %v250_v45 = vmax.f32 %v200_v40, 0.0 }
  0xeb   :  { %v249_v43 = vmax.f32 %v195_v42, 0.0  ;;  %v570_v44 = vpop.f32.mrb[8].mxu0 }
  0xec   :  { %v210_v46 = vadd.f32 %v570_v44, %v482_v20  ;;  %v204_v47 = vpop.f32.mrb[9].mxu0 }
  0xed   :  { %v205_v48 = vadd.f32 %v482_v20, %v204_v47  ;;  %591 = vmatprep.mubr.msk.f32.mxu1 %vm267_vm4, %v249_v43 }
  0xee   :  { %592 = vmatmul.mubr.msk.f32.gmra.mrb[6].mxu1 %vm267_vm4, %v250_v45  ;;  %v252_v51 = vmax.f32 %v210_v46, 0.0 }
  0xef   :  { %v251_v49 = vmax.f32 %v205_v48, 0.0  ;;  %v573_v50 = vpop.f32.mrb[10].mxu0 }
  0xf0   :  { %v220_v52 = vadd.f32 %v573_v50, %v482_v20  ;;  %v214_v53 = vpop.f32.mrb[11].mxu0 }
  0xf1   :  { %v215_v54 = vadd.f32 %v482_v20, %v214_v53  ;;  %594 = vmatprep.mubr.msk.f32.mxu1 %vm267_vm4, %v251_v49 }
  0xf2   :  { %595 = vmatmul.mubr.msk.f32.gmra.mrb[8].mxu1 %vm267_vm4, %v252_v51  ;;  %v254_v57 = vmax.f32 %v220_v52, 0.0 }
  0xf3   :  { %v253_v55 = vmax.f32 %v215_v54, 0.0  ;;  %v576_v56 = vpop.f32.mrb[12].mxu0 }
  0xf4   :  { %v230_v58 = vadd.f32 %v576_v56, %v482_v20  ;;  %v224_v59 = vpop.f32.mrb[13].mxu0 }
  0xf5   :  { %v225_v60 = vadd.f32 %v482_v20, %v224_v59  ;;  %597 = vmatprep.mubr.msk.f32.mxu1 %vm267_vm4, %v253_v55 }
  0xf6   :  { %598 = vmatmul.mubr.msk.f32.gmra.mrb[10].mxu1 %vm267_vm4, %v254_v57  ;;  %v256_v63 = vmax.f32 %v230_v58, 0.0 }
  0xf7   :  { %v255_v61 = vmax.f32 %v225_v60, 0.0  ;;  %v579_v62 = vpop.f32.mrb[14].mxu0 }
  0xf8   :  { %v240_v0 = vadd.f32 %v579_v62, %v482_v20  ;;  %v234_v1 = vpop.f32.mrb[15].mxu0 }
  0xf9   :  { %v235_v2 = vadd.f32 %v482_v20, %v234_v1  ;;  %600 = vmatprep.mubr.msk.f32.mxu1 %vm267_vm4, %v255_v61 }
  0xfa   :  { %601 = vmatmul.mubr.msk.f32.gmra.mrb[12].mxu1 %vm267_vm4, %v256_v63  ;;  %v258_v4 = vmax.f32 %v240_v0, 0.0 }
  0xfb   :  { %v257_v3 = vmax.f32 %v235_v2, 0.0 }
  0xfd   :  { %603 = vmatprep.mubr.msk.f32.mxu1 %vm267_vm4, %v257_v3 }
  0xfe   :  { %604 = vmatmul.mubr.msk.f32.gmra.mrb[14].mxu1 %vm267_vm4, %v258_v4 }
 0x1b5   :  { %v584_v6 = vpop.f32.mrb[0].mxu1 }
 0x1b6   :  { %v388_v7 = vadd.f32 %v584_v6, %v500_v5  ;;  %v382_v8 = vpop.f32.mrb[1].mxu1 }
 0x1b7   :  { %v383_v9 = vadd.f32 %v500_v5, %v382_v8 }
 0x1b8   :  { %463 = vst.msk [vmem:[%s808_s5 + $0x8] sm:$0xff] %vm461_vm5, %v388_v7 }
 0x1b9   :  { %462 = vst.msk [vmem:[%s808_s5] sm:$0xff] %vm461_vm5, %v383_v9  ;;  %v587_v10 = vpop.f32.mrb[2].mxu1 }
 0x1ba   :  { %v398_v11 = vadd.f32 %v587_v10, %v500_v5  ;;  %v392_v12 = vpop.f32.mrb[3].mxu1 }
 0x1bb   :  { %v393_v13 = vadd.f32 %v500_v5, %v392_v12 }
 0x1bc   :  { %465 = vst.msk [vmem:[%s808_s5 + $0x18] sm:$0xff] %vm461_vm5, %v398_v11 }
 0x1bd   :  { %464 = vst.msk [vmem:[%s808_s5 + $0x10] sm:$0xff] %vm461_vm5, %v393_v13  ;;  %v590_v14 = vpop.f32.mrb[4].mxu1 }
 0x1be   :  { %v408_v15 = vadd.f32 %v590_v14, %v500_v5  ;;  %v402_v16 = vpop.f32.mrb[5].mxu1 }
 0x1bf   :  { %v403_v17 = vadd.f32 %v500_v5, %v402_v16 }
 0x1c0   :  { %467 = vst.msk [vmem:[%s808_s5 + $0x28] sm:$0xff] %vm461_vm5, %v408_v15 }
 0x1c1   :  { %466 = vst.msk [vmem:[%s808_s5 + $0x20] sm:$0xff] %vm461_vm5, %v403_v17  ;;  %v593_v18 = vpop.f32.mrb[6].mxu1 }
 0x1c2   :  { %v418_v19 = vadd.f32 %v593_v18, %v500_v5  ;;  %v412_v20 = vpop.f32.mrb[7].mxu1 }
 0x1c3   :  { %v413_v21 = vadd.f32 %v500_v5, %v412_v20 }
 0x1c4   :  { %469 = vst.msk [vmem:[%s808_s5 + $0x38] sm:$0xff] %vm461_vm5, %v418_v19 }
 0x1c5   :  { %468 = vst.msk [vmem:[%s808_s5 + $0x30] sm:$0xff] %vm461_vm5, %v413_v21  ;;  %v596_v22 = vpop.f32.mrb[8].mxu1 }
 0x1c6   :  { %v428_v23 = vadd.f32 %v596_v22, %v500_v5  ;;  %v422_v24 = vpop.f32.mrb[9].mxu1 }
 0x1c7   :  { %v423_v25 = vadd.f32 %v500_v5, %v422_v24 }
 0x1c8   :  { %471 = vst.msk [vmem:[%s808_s5 + $0x48] sm:$0xff] %vm461_vm5, %v428_v23 }
 0x1c9   :  { %470 = vst.msk [vmem:[%s808_s5 + $0x40] sm:$0xff] %vm461_vm5, %v423_v25  ;;  %v599_v26 = vpop.f32.mrb[10].mxu1 }
 0x1ca   :  { %v438_v27 = vadd.f32 %v599_v26, %v500_v5  ;;  %v432_v28 = vpop.f32.mrb[11].mxu1 }
 0x1cb   :  { %v433_v29 = vadd.f32 %v500_v5, %v432_v28 }
 0x1cc   :  { %473 = vst.msk [vmem:[%s808_s5 + $0x58] sm:$0xff] %vm461_vm5, %v438_v27 }
 0x1cd   :  { %472 = vst.msk [vmem:[%s808_s5 + $0x50] sm:$0xff] %vm461_vm5, %v433_v29  ;;  %v602_v30 = vpop.f32.mrb[12].mxu1 }
 0x1ce   :  { %v448_v31 = vadd.f32 %v602_v30, %v500_v5  ;;  %v442_v32 = vpop.f32.mrb[13].mxu1 }
 0x1cf   :  { %v443_v33 = vadd.f32 %v500_v5, %v442_v32 }
 0x1d0   :  { %475 = vst.msk [vmem:[%s808_s5 + $0x68] sm:$0xff] %vm461_vm5, %v448_v31 }
 0x1d1   :  { %474 = vst.msk [vmem:[%s808_s5 + $0x60] sm:$0xff] %vm461_vm5, %v443_v33  ;;  %v605_v34 = vpop.f32.mrb[14].mxu1 }
 0x1d2   :  { %v458_v35 = vadd.f32 %v605_v34, %v500_v5  ;;  %v452_v36 = vpop.f32.mrb[15].mxu1 }
 0x1d3   :  { %v453_v37 = vadd.f32 %v500_v5, %v452_v36 }
 0x1d4   :  { %477 = vst.msk [vmem:[%s808_s5 + $0x78] sm:$0xff] %vm461_vm5, %v458_v35 }
 0x1d5   :  { %476 = vst.msk [vmem:[%s808_s5 + $0x70] sm:$0xff] %vm461_vm5, %v453_v37 }

</bundles_post_ra>
